<compile_context>
chip_gen: v6e
topology: v6e:2x2x1
jax: 0.10.0
libtpu: 0.0.40
codegen_flags: <defaults>
</compile_context>

<pallas_src>
import functools

import jax
import jax.numpy as jnp
from jax.experimental import pallas as pl
from jax.experimental.pallas import tpu as pltpu


def _lstm_mlp_kernel(x_ref, wih_ref, whh_ref, b_ref,
                     fc1w_ref, fc1b_ref, fc2w_ref, fc2b_ref,
                     out_ref, *, seq_len):
    """Single-invocation kernel: full LSTM unroll over time + MLP head.

    Shapes (all resident in VMEM):
      x_ref    : (B, T, I)  f32, batch-first (torch layout), unpadded
      wih_ref  : (I, 4H)    bf16, PyTorch gate order (i, f, g, o)
      whh_ref  : (H, 4H)    bf16, PyTorch gate order (i, f, g, o)
      b_ref    : (1, 4H)    f32, b_ih + b_hh
      fc1w_ref : (H, H1) bf16, fc1b_ref : (1, H1) f32
      fc2w_ref : (H1, O) bf16, fc2b_ref : (1, O) f32
      out_ref  : (B, O)     f32
    """
    B, T, I = x_ref.shape
    assert T == seq_len
    H = whh_ref.shape[0]

    # --- Hoisted input projection for ALL timesteps, bias folded in: a single
    #     (B*T, I) @ (I, 4H) bf16 MXU pass (f32 accumulate). ---
    x2 = x_ref[...].reshape(B * T, I).astype(jnp.bfloat16)       # tile-natural reshape
    gates_x = (jnp.dot(x2, wih_ref[...], preferred_element_type=jnp.float32)
               + b_ref[...])                                     # (B*T, 4H) f32
    gates_x = gates_x.reshape(B, T, 4 * H)                       # (B, T, 4H), free

    whh = whh_ref[...]                                           # (H, 4H) bf16
    h = jnp.zeros((B, H), jnp.float32)
    c = jnp.zeros((B, H), jnp.float32)

    # Static unroll: T is a small compile-time constant; adjacent steps' independent
    # pieces (gate-slab slices, EUP pushes) can be interleaved by the scheduler.
    for t in range(T):
        pre = (jnp.dot(h.astype(jnp.bfloat16), whh,
                       preferred_element_type=jnp.float32)
               + gates_x[:, t, :])                               # (B, 4H)
        # Full-vreg EUP pushes; pick gate lane-groups from the activated slabs.
        sg = jax.nn.sigmoid(pre)                                 # i | f | . | o
        tg = jnp.tanh(pre)                                       # . | . | g | .
        i_g = sg[:, 0 * H:1 * H]
        f_g = sg[:, 1 * H:2 * H]
        g_g = tg[:, 2 * H:3 * H]
        o_g = sg[:, 3 * H:4 * H]
        c = f_g * c + i_g * g_g
        h = o_g * jnp.tanh(c)

    # fc_layers on the last hidden state: Linear -> ReLU -> Linear -> Tanh.
    h1 = jnp.maximum(
        jnp.dot(h.astype(jnp.bfloat16), fc1w_ref[...],
                preferred_element_type=jnp.float32) + fc1b_ref[...],
        0.0)
    out = jnp.tanh(
        jnp.dot(h1.astype(jnp.bfloat16), fc2w_ref[...],
                preferred_element_type=jnp.float32) + fc2b_ref[...])
    # NOTE: O=8 < 128 lanes -> one-time masked partial store; negligible at this size.
    out_ref[...] = out.astype(out_ref.dtype)


@functools.partial(jax.jit, static_argnames=("output_size",))
def recurrent_forward(x_btI, params, output_size):
    """x_btI: (B, T, I) batch-first input (torch layout). Returns (B, output_size)."""
    B, T, I = x_btI.shape
    kernel = functools.partial(_lstm_mlp_kernel, seq_len=T)
    # v7x note: at B=2 a single ungridded call is right; only at much larger batch would a
    # leading "parallel" batch grid axis (2nd TensorCore) pay off.
    return pl.pallas_call(
        kernel,
        out_shape=jax.ShapeDtypeStruct((B, output_size), jnp.float32),
        in_specs=[pl.BlockSpec(memory_space=pltpu.MemorySpace.VMEM)] * 8,
        out_specs=pl.BlockSpec(memory_space=pltpu.MemorySpace.VMEM),
    )(x_btI, *params)


def init_torch_params(key, input_size, hidden_sizes, output_size):
    """Deterministic init mimicking PyTorch uniform(-1/sqrt(fan), 1/sqrt(fan)).
    Returns weights in PyTorch shapes / PyTorch gate order (i, f, g, o)."""
    H, H1 = hidden_sizes[0], hidden_sizes[1]
    ks = jax.random.split(key, 8)

    def u(k, shape, fan):
        bound = 1.0 / jnp.sqrt(fan)
        return jax.random.uniform(k, shape, jnp.float32, -bound, bound)

    w_ih = u(ks[0], (4 * H, input_size), H)       # weight_ih_l0
    w_hh = u(ks[1], (4 * H, H), H)                # weight_hh_l0
    b_ih = u(ks[2], (4 * H,), H)
    b_hh = u(ks[3], (4 * H,), H)
    fc1_w = u(ks[4], (H1, H), H)
    fc1_b = u(ks[5], (H1,), H)
    fc2_w = u(ks[6], (output_size, H1), H1)
    fc2_b = u(ks[7], (output_size,), H1)
    return (w_ih, w_hh, b_ih, b_hh, fc1_w, fc1_b, fc2_w, fc2_b)


def pack_params(torch_params):
    """Transpose weights to (in, out), cast matmul weights to bf16, fold the LSTM biases.
    Gate columns stay in PyTorch order (i, f, g, o)."""
    w_ih, w_hh, b_ih, b_hh, fc1_w, fc1_b, fc2_w, fc2_b = torch_params
    H4 = w_ih.shape[0]
    return (
        w_ih.T.astype(jnp.bfloat16),                  # (I, 4H)
        w_hh.T.astype(jnp.bfloat16),                  # (H, 4H)
        (b_ih + b_hh).reshape(1, H4),                 # (1, 4H) f32
        fc1_w.T.astype(jnp.bfloat16),                 # (H, H1)
        fc1_b.reshape(1, -1),                         # (1, H1) f32
        fc2_w.T.astype(jnp.bfloat16),                 # (H1, O)
        fc2_b.reshape(1, -1),                         # (1, O) f32
    )


def reference_forward(x_btI, torch_params):
    """Pure-JAX f32 reference of the same math in PyTorch layout / gate order."""
    w_ih, w_hh, b_ih, b_hh, fc1_w, fc1_b, fc2_w, fc2_b = torch_params
    B, T, I = x_btI.shape
    H = w_hh.shape[1]
    h = jnp.zeros((B, H), jnp.float32)
    c = jnp.zeros((B, H), jnp.float32)
    for t in range(T):
        gates = x_btI[:, t, :] @ w_ih.T + h @ w_hh.T + b_ih + b_hh
        i_g = jax.nn.sigmoid(gates[:, 0 * H:1 * H])
        f_g = jax.nn.sigmoid(gates[:, 1 * H:2 * H])
        g_g = jnp.tanh(gates[:, 2 * H:3 * H])
        o_g = jax.nn.sigmoid(gates[:, 3 * H:4 * H])
        c = f_g * c + i_g * g_g
        h = o_g * jnp.tanh(c)
    h1 = jnp.maximum(h @ fc1_w.T + fc1_b, 0.0)
    return jnp.tanh(h1 @ fc2_w.T + fc2_b)


if __name__ == "__main__":
    # Config consistent with the module's constructor:
    # RecurrentNeuralNetwork(input_size=4, hidden_sizes=[32, 16], output_size=8,
    #                        recurrent_type='lstm', sequence_length=8)
    input_size = 4
    hidden_sizes = [32, 16]
    output_size = 8
    batch = 2
    seq = 8

    key = jax.random.PRNGKey(0)
    k_x, k_p = jax.random.split(key)

    # torch-style input: (batch, seq, input_size), batch_first=True
    x = jax.random.normal(k_x, (batch, seq, input_size), jnp.float32)
    torch_params = init_torch_params(k_p, input_size, hidden_sizes, output_size)
    params = pack_params(torch_params)

    out = recurrent_forward(x, params, output_size)
    out = jax.block_until_ready(out)

    ref = reference_forward(x, torch_params)
    assert out.shape == (batch, output_size)
    # Tolerance relaxed vs the f32 reference because matmul operands are bf16 (f32 acc).
    assert jnp.allclose(out, ref, atol=2e-2, rtol=2e-2), "mismatch vs pure-JAX reference"

    print("KERNEL_OK")
</pallas_src>

<mosaic_0001>
module attributes {stable_mosaic.version = 11 : i64} {
  func.func @_lstm_mlp_kernel(%arg0: memref<2x8x4xf32, #tpu.memory_space<vmem>>, %arg1: memref<4x128xbf16, #tpu.memory_space<vmem>>, %arg2: memref<32x128xbf16, #tpu.memory_space<vmem>>, %arg3: memref<1x128xf32, #tpu.memory_space<vmem>>, %arg4: memref<32x16xbf16, #tpu.memory_space<vmem>>, %arg5: memref<1x16xf32, #tpu.memory_space<vmem>>, %arg6: memref<16x8xbf16, #tpu.memory_space<vmem>>, %arg7: memref<1x8xf32, #tpu.memory_space<vmem>>, %arg8: memref<2x8xf32, #tpu.memory_space<vmem>>) attributes {dimension_semantics = [], scalar_prefetch = 0 : i64, scratch_operands = 0 : i64, tpu.core_type = #tpu.core_type<tc>} {
    %c0 = arith.constant 0 : index
    %c0_0 = arith.constant 0 : index
    %c0_1 = arith.constant 0 : index
    %0 = vector.load %arg0[%c0, %c0_0, %c0_1] : memref<2x8x4xf32, #tpu.memory_space<vmem>>, vector<2x8x4xf32>
    %1 = vector.shape_cast %0 : vector<2x8x4xf32> to vector<16x4xf32>
    %2 = arith.truncf %1 : vector<16x4xf32> to vector<16x4xbf16>
    %c0_2 = arith.constant 0 : index
    %c0_3 = arith.constant 0 : index
    %3 = vector.load %arg1[%c0_2, %c0_3] : memref<4x128xbf16, #tpu.memory_space<vmem>>, vector<4x128xbf16>
    %cst = arith.constant dense<0.000000e+00> : vector<16x128xf32>
    %4 = tpu.matmul %2, %3, %cst {dimension_numbers = #tpu.dot_dimension_numbers<[1], [0], [0], [1], [0, 0, 1, 1], [], []>} : vector<16x4xbf16>, vector<4x128xbf16>, vector<16x128xf32> -> vector<16x128xf32>
    %c0_4 = arith.constant 0 : index
    %c0_5 = arith.constant 0 : index
    %5 = vector.load %arg3[%c0_4, %c0_5] : memref<1x128xf32, #tpu.memory_space<vmem>>, vector<1x128xf32>
    %6 = vector.broadcast %5 : vector<1x128xf32> to vector<16x128xf32>
    %7 = arith.addf %4, %6 : vector<16x128xf32>
    %8 = vector.shape_cast %7 : vector<16x128xf32> to vector<2x8x128xf32>
    %c0_6 = arith.constant 0 : index
    %c0_7 = arith.constant 0 : index
    %9 = vector.load %arg2[%c0_6, %c0_7] : memref<32x128xbf16, #tpu.memory_space<vmem>>, vector<32x128xbf16>
    %cst_8 = arith.constant 0.000000e+00 : f32
    %10 = vector.broadcast %cst_8 : f32 to vector<2x32xf32>
    %cst_9 = arith.constant 0.000000e+00 : f32
    %11 = vector.broadcast %cst_9 : f32 to vector<2x32xf32>
    %12 = arith.truncf %10 : vector<2x32xf32> to vector<2x32xbf16>
    %cst_10 = arith.constant dense<0.000000e+00> : vector<2x128xf32>
    %13 = tpu.matmul %12, %9, %cst_10 {dimension_numbers = #tpu.dot_dimension_numbers<[1], [0], [0], [1], [0, 0, 1, 1], [], []>} : vector<2x32xbf16>, vector<32x128xbf16>, vector<2x128xf32> -> vector<2x128xf32>
    %14 = vector.extract_strided_slice %8 {offsets = [0, 0, 0], sizes = [2, 1, 128], strides = [1, 1, 1]} : vector<2x8x128xf32> to vector<2x1x128xf32>
    %15 = vector.shape_cast %14 : vector<2x1x128xf32> to vector<2x128xf32>
    %16 = arith.addf %13, %15 : vector<2x128xf32>
    %17 = arith.negf %16 : vector<2x128xf32>
    %18 = math.exp %17 : vector<2x128xf32>
    %cst_11 = arith.constant 1.000000e+00 : f32
    %19 = vector.broadcast %cst_11 : f32 to vector<2x128xf32>
    %20 = arith.addf %19, %18 : vector<2x128xf32>
    %21 = arith.divf %19, %20 : vector<2x128xf32>
    %22 = math.tanh %16 : vector<2x128xf32>
    %23 = vector.extract_strided_slice %21 {offsets = [0, 0], sizes = [2, 32], strides = [1, 1]} : vector<2x128xf32> to vector<2x32xf32>
    %24 = vector.extract_strided_slice %21 {offsets = [0, 32], sizes = [2, 32], strides = [1, 1]} : vector<2x128xf32> to vector<2x32xf32>
    %25 = vector.extract_strided_slice %22 {offsets = [0, 64], sizes = [2, 32], strides = [1, 1]} : vector<2x128xf32> to vector<2x32xf32>
    %26 = vector.extract_strided_slice %21 {offsets = [0, 96], sizes = [2, 32], strides = [1, 1]} : vector<2x128xf32> to vector<2x32xf32>
    %27 = arith.mulf %24, %11 : vector<2x32xf32>
    %28 = arith.mulf %23, %25 : vector<2x32xf32>
    %29 = arith.addf %27, %28 : vector<2x32xf32>
    %30 = math.tanh %29 : vector<2x32xf32>
    %31 = arith.mulf %26, %30 : vector<2x32xf32>
    %32 = arith.truncf %31 : vector<2x32xf32> to vector<2x32xbf16>
    %cst_12 = arith.constant dense<0.000000e+00> : vector<2x128xf32>
    %33 = tpu.matmul %32, %9, %cst_12 {dimension_numbers = #tpu.dot_dimension_numbers<[1], [0], [0], [1], [0, 0, 1, 1], [], []>} : vector<2x32xbf16>, vector<32x128xbf16>, vector<2x128xf32> -> vector<2x128xf32>
    %34 = vector.extract_strided_slice %8 {offsets = [0, 1, 0], sizes = [2, 1, 128], strides = [1, 1, 1]} : vector<2x8x128xf32> to vector<2x1x128xf32>
    %35 = vector.shape_cast %34 : vector<2x1x128xf32> to vector<2x128xf32>
    %36 = arith.addf %33, %35 : vector<2x128xf32>
    %37 = arith.negf %36 : vector<2x128xf32>
    %38 = math.exp %37 : vector<2x128xf32>
    %cst_13 = arith.constant 1.000000e+00 : f32
    %39 = vector.broadcast %cst_13 : f32 to vector<2x128xf32>
    %40 = arith.addf %39, %38 : vector<2x128xf32>
    %41 = arith.divf %39, %40 : vector<2x128xf32>
    %42 = math.tanh %36 : vector<2x128xf32>
    %43 = vector.extract_strided_slice %41 {offsets = [0, 0], sizes = [2, 32], strides = [1, 1]} : vector<2x128xf32> to vector<2x32xf32>
    %44 = vector.extract_strided_slice %41 {offsets = [0, 32], sizes = [2, 32], strides = [1, 1]} : vector<2x128xf32> to vector<2x32xf32>
    %45 = vector.extract_strided_slice %42 {offsets = [0, 64], sizes = [2, 32], strides = [1, 1]} : vector<2x128xf32> to vector<2x32xf32>
    %46 = vector.extract_strided_slice %41 {offsets = [0, 96], sizes = [2, 32], strides = [1, 1]} : vector<2x128xf32> to vector<2x32xf32>
    %47 = arith.mulf %44, %29 : vector<2x32xf32>
    %48 = arith.mulf %43, %45 : vector<2x32xf32>
    %49 = arith.addf %47, %48 : vector<2x32xf32>
    %50 = math.tanh %49 : vector<2x32xf32>
    %51 = arith.mulf %46, %50 : vector<2x32xf32>
    %52 = arith.truncf %51 : vector<2x32xf32> to vector<2x32xbf16>
    %cst_14 = arith.constant dense<0.000000e+00> : vector<2x128xf32>
    %53 = tpu.matmul %52, %9, %cst_14 {dimension_numbers = #tpu.dot_dimension_numbers<[1], [0], [0], [1], [0, 0, 1, 1], [], []>} : vector<2x32xbf16>, vector<32x128xbf16>, vector<2x128xf32> -> vector<2x128xf32>
    %54 = vector.extract_strided_slice %8 {offsets = [0, 2, 0], sizes = [2, 1, 128], strides = [1, 1, 1]} : vector<2x8x128xf32> to vector<2x1x128xf32>
    %55 = vector.shape_cast %54 : vector<2x1x128xf32> to vector<2x128xf32>
    %56 = arith.addf %53, %55 : vector<2x128xf32>
    %57 = arith.negf %56 : vector<2x128xf32>
    %58 = math.exp %57 : vector<2x128xf32>
    %cst_15 = arith.constant 1.000000e+00 : f32
    %59 = vector.broadcast %cst_15 : f32 to vector<2x128xf32>
    %60 = arith.addf %59, %58 : vector<2x128xf32>
    %61 = arith.divf %59, %60 : vector<2x128xf32>
    %62 = math.tanh %56 : vector<2x128xf32>
    %63 = vector.extract_strided_slice %61 {offsets = [0, 0], sizes = [2, 32], strides = [1, 1]} : vector<2x128xf32> to vector<2x32xf32>
    %64 = vector.extract_strided_slice %61 {offsets = [0, 32], sizes = [2, 32], strides = [1, 1]} : vector<2x128xf32> to vector<2x32xf32>
    %65 = vector.extract_strided_slice %62 {offsets = [0, 64], sizes = [2, 32], strides = [1, 1]} : vector<2x128xf32> to vector<2x32xf32>
    %66 = vector.extract_strided_slice %61 {offsets = [0, 96], sizes = [2, 32], strides = [1, 1]} : vector<2x128xf32> to vector<2x32xf32>
    %67 = arith.mulf %64, %49 : vector<2x32xf32>
    %68 = arith.mulf %63, %65 : vector<2x32xf32>
    %69 = arith.addf %67, %68 : vector<2x32xf32>
    %70 = math.tanh %69 : vector<2x32xf32>
    %71 = arith.mulf %66, %70 : vector<2x32xf32>
    %72 = arith.truncf %71 : vector<2x32xf32> to vector<2x32xbf16>
    %cst_16 = arith.constant dense<0.000000e+00> : vector<2x128xf32>
    %73 = tpu.matmul %72, %9, %cst_16 {dimension_numbers = #tpu.dot_dimension_numbers<[1], [0], [0], [1], [0, 0, 1, 1], [], []>} : vector<2x32xbf16>, vector<32x128xbf16>, vector<2x128xf32> -> vector<2x128xf32>
    %74 = vector.extract_strided_slice %8 {offsets = [0, 3, 0], sizes = [2, 1, 128], strides = [1, 1, 1]} : vector<2x8x128xf32> to vector<2x1x128xf32>
    %75 = vector.shape_cast %74 : vector<2x1x128xf32> to vector<2x128xf32>
    %76 = arith.addf %73, %75 : vector<2x128xf32>
    %77 = arith.negf %76 : vector<2x128xf32>
    %78 = math.exp %77 : vector<2x128xf32>
    %cst_17 = arith.constant 1.000000e+00 : f32
    %79 = vector.broadcast %cst_17 : f32 to vector<2x128xf32>
    %80 = arith.addf %79, %78 : vector<2x128xf32>
    %81 = arith.divf %79, %80 : vector<2x128xf32>
    %82 = math.tanh %76 : vector<2x128xf32>
    %83 = vector.extract_strided_slice %81 {offsets = [0, 0], sizes = [2, 32], strides = [1, 1]} : vector<2x128xf32> to vector<2x32xf32>
    %84 = vector.extract_strided_slice %81 {offsets = [0, 32], sizes = [2, 32], strides = [1, 1]} : vector<2x128xf32> to vector<2x32xf32>
    %85 = vector.extract_strided_slice %82 {offsets = [0, 64], sizes = [2, 32], strides = [1, 1]} : vector<2x128xf32> to vector<2x32xf32>
    %86 = vector.extract_strided_slice %81 {offsets = [0, 96], sizes = [2, 32], strides = [1, 1]} : vector<2x128xf32> to vector<2x32xf32>
    %87 = arith.mulf %84, %69 : vector<2x32xf32>
    %88 = arith.mulf %83, %85 : vector<2x32xf32>
    %89 = arith.addf %87, %88 : vector<2x32xf32>
    %90 = math.tanh %89 : vector<2x32xf32>
    %91 = arith.mulf %86, %90 : vector<2x32xf32>
    %92 = arith.truncf %91 : vector<2x32xf32> to vector<2x32xbf16>
    %cst_18 = arith.constant dense<0.000000e+00> : vector<2x128xf32>
    %93 = tpu.matmul %92, %9, %cst_18 {dimension_numbers = #tpu.dot_dimension_numbers<[1], [0], [0], [1], [0, 0, 1, 1], [], []>} : vector<2x32xbf16>, vector<32x128xbf16>, vector<2x128xf32> -> vector<2x128xf32>
    %94 = vector.extract_strided_slice %8 {offsets = [0, 4, 0], sizes = [2, 1, 128], strides = [1, 1, 1]} : vector<2x8x128xf32> to vector<2x1x128xf32>
    %95 = vector.shape_cast %94 : vector<2x1x128xf32> to vector<2x128xf32>
    %96 = arith.addf %93, %95 : vector<2x128xf32>
    %97 = arith.negf %96 : vector<2x128xf32>
    %98 = math.exp %97 : vector<2x128xf32>
    %cst_19 = arith.constant 1.000000e+00 : f32
    %99 = vector.broadcast %cst_19 : f32 to vector<2x128xf32>
    %100 = arith.addf %99, %98 : vector<2x128xf32>
    %101 = arith.divf %99, %100 : vector<2x128xf32>
    %102 = math.tanh %96 : vector<2x128xf32>
    %103 = vector.extract_strided_slice %101 {offsets = [0, 0], sizes = [2, 32], strides = [1, 1]} : vector<2x128xf32> to vector<2x32xf32>
    %104 = vector.extract_strided_slice %101 {offsets = [0, 32], sizes = [2, 32], strides = [1, 1]} : vector<2x128xf32> to vector<2x32xf32>
    %105 = vector.extract_strided_slice %102 {offsets = [0, 64], sizes = [2, 32], strides = [1, 1]} : vector<2x128xf32> to vector<2x32xf32>
    %106 = vector.extract_strided_slice %101 {offsets = [0, 96], sizes = [2, 32], strides = [1, 1]} : vector<2x128xf32> to vector<2x32xf32>
    %107 = arith.mulf %104, %89 : vector<2x32xf32>
    %108 = arith.mulf %103, %105 : vector<2x32xf32>
    %109 = arith.addf %107, %108 : vector<2x32xf32>
    %110 = math.tanh %109 : vector<2x32xf32>
    %111 = arith.mulf %106, %110 : vector<2x32xf32>
    %112 = arith.truncf %111 : vector<2x32xf32> to vector<2x32xbf16>
    %cst_20 = arith.constant dense<0.000000e+00> : vector<2x128xf32>
    %113 = tpu.matmul %112, %9, %cst_20 {dimension_numbers = #tpu.dot_dimension_numbers<[1], [0], [0], [1], [0, 0, 1, 1], [], []>} : vector<2x32xbf16>, vector<32x128xbf16>, vector<2x128xf32> -> vector<2x128xf32>
    %114 = vector.extract_strided_slice %8 {offsets = [0, 5, 0], sizes = [2, 1, 128], strides = [1, 1, 1]} : vector<2x8x128xf32> to vector<2x1x128xf32>
    %115 = vector.shape_cast %114 : vector<2x1x128xf32> to vector<2x128xf32>
    %116 = arith.addf %113, %115 : vector<2x128xf32>
    %117 = arith.negf %116 : vector<2x128xf32>
    %118 = math.exp %117 : vector<2x128xf32>
    %cst_21 = arith.constant 1.000000e+00 : f32
    %119 = vector.broadcast %cst_21 : f32 to vector<2x128xf32>
    %120 = arith.addf %119, %118 : vector<2x128xf32>
    %121 = arith.divf %119, %120 : vector<2x128xf32>
    %122 = math.tanh %116 : vector<2x128xf32>
    %123 = vector.extract_strided_slice %121 {offsets = [0, 0], sizes = [2, 32], strides = [1, 1]} : vector<2x128xf32> to vector<2x32xf32>
    %124 = vector.extract_strided_slice %121 {offsets = [0, 32], sizes = [2, 32], strides = [1, 1]} : vector<2x128xf32> to vector<2x32xf32>
    %125 = vector.extract_strided_slice %122 {offsets = [0, 64], sizes = [2, 32], strides = [1, 1]} : vector<2x128xf32> to vector<2x32xf32>
    %126 = vector.extract_strided_slice %121 {offsets = [0, 96], sizes = [2, 32], strides = [1, 1]} : vector<2x128xf32> to vector<2x32xf32>
    %127 = arith.mulf %124, %109 : vector<2x32xf32>
    %128 = arith.mulf %123, %125 : vector<2x32xf32>
    %129 = arith.addf %127, %128 : vector<2x32xf32>
    %130 = math.tanh %129 : vector<2x32xf32>
    %131 = arith.mulf %126, %130 : vector<2x32xf32>
    %132 = arith.truncf %131 : vector<2x32xf32> to vector<2x32xbf16>
    %cst_22 = arith.constant dense<0.000000e+00> : vector<2x128xf32>
    %133 = tpu.matmul %132, %9, %cst_22 {dimension_numbers = #tpu.dot_dimension_numbers<[1], [0], [0], [1], [0, 0, 1, 1], [], []>} : vector<2x32xbf16>, vector<32x128xbf16>, vector<2x128xf32> -> vector<2x128xf32>
    %134 = vector.extract_strided_slice %8 {offsets = [0, 6, 0], sizes = [2, 1, 128], strides = [1, 1, 1]} : vector<2x8x128xf32> to vector<2x1x128xf32>
    %135 = vector.shape_cast %134 : vector<2x1x128xf32> to vector<2x128xf32>
    %136 = arith.addf %133, %135 : vector<2x128xf32>
    %137 = arith.negf %136 : vector<2x128xf32>
    %138 = math.exp %137 : vector<2x128xf32>
    %cst_23 = arith.constant 1.000000e+00 : f32
    %139 = vector.broadcast %cst_23 : f32 to vector<2x128xf32>
    %140 = arith.addf %139, %138 : vector<2x128xf32>
    %141 = arith.divf %139, %140 : vector<2x128xf32>
    %142 = math.tanh %136 : vector<2x128xf32>
    %143 = vector.extract_strided_slice %141 {offsets = [0, 0], sizes = [2, 32], strides = [1, 1]} : vector<2x128xf32> to vector<2x32xf32>
    %144 = vector.extract_strided_slice %141 {offsets = [0, 32], sizes = [2, 32], strides = [1, 1]} : vector<2x128xf32> to vector<2x32xf32>
    %145 = vector.extract_strided_slice %142 {offsets = [0, 64], sizes = [2, 32], strides = [1, 1]} : vector<2x128xf32> to vector<2x32xf32>
    %146 = vector.extract_strided_slice %141 {offsets = [0, 96], sizes = [2, 32], strides = [1, 1]} : vector<2x128xf32> to vector<2x32xf32>
    %147 = arith.mulf %144, %129 : vector<2x32xf32>
    %148 = arith.mulf %143, %145 : vector<2x32xf32>
    %149 = arith.addf %147, %148 : vector<2x32xf32>
    %150 = math.tanh %149 : vector<2x32xf32>
    %151 = arith.mulf %146, %150 : vector<2x32xf32>
    %152 = arith.truncf %151 : vector<2x32xf32> to vector<2x32xbf16>
    %cst_24 = arith.constant dense<0.000000e+00> : vector<2x128xf32>
    %153 = tpu.matmul %152, %9, %cst_24 {dimension_numbers = #tpu.dot_dimension_numbers<[1], [0], [0], [1], [0, 0, 1, 1], [], []>} : vector<2x32xbf16>, vector<32x128xbf16>, vector<2x128xf32> -> vector<2x128xf32>
    %154 = vector.extract_strided_slice %8 {offsets = [0, 7, 0], sizes = [2, 1, 128], strides = [1, 1, 1]} : vector<2x8x128xf32> to vector<2x1x128xf32>
    %155 = vector.shape_cast %154 : vector<2x1x128xf32> to vector<2x128xf32>
    %156 = arith.addf %153, %155 : vector<2x128xf32>
    %157 = arith.negf %156 : vector<2x128xf32>
    %158 = math.exp %157 : vector<2x128xf32>
    %cst_25 = arith.constant 1.000000e+00 : f32
    %159 = vector.broadcast %cst_25 : f32 to vector<2x128xf32>
    %160 = arith.addf %159, %158 : vector<2x128xf32>
    %161 = arith.divf %159, %160 : vector<2x128xf32>
    %162 = math.tanh %156 : vector<2x128xf32>
    %163 = vector.extract_strided_slice %161 {offsets = [0, 0], sizes = [2, 32], strides = [1, 1]} : vector<2x128xf32> to vector<2x32xf32>
    %164 = vector.extract_strided_slice %161 {offsets = [0, 32], sizes = [2, 32], strides = [1, 1]} : vector<2x128xf32> to vector<2x32xf32>
    %165 = vector.extract_strided_slice %162 {offsets = [0, 64], sizes = [2, 32], strides = [1, 1]} : vector<2x128xf32> to vector<2x32xf32>
    %166 = vector.extract_strided_slice %161 {offsets = [0, 96], sizes = [2, 32], strides = [1, 1]} : vector<2x128xf32> to vector<2x32xf32>
    %167 = arith.mulf %164, %149 : vector<2x32xf32>
    %168 = arith.mulf %163, %165 : vector<2x32xf32>
    %169 = arith.addf %167, %168 : vector<2x32xf32>
    %170 = math.tanh %169 : vector<2x32xf32>
    %171 = arith.mulf %166, %170 : vector<2x32xf32>
    %172 = arith.truncf %171 : vector<2x32xf32> to vector<2x32xbf16>
    %c0_26 = arith.constant 0 : index
    %c0_27 = arith.constant 0 : index
    %173 = vector.load %arg4[%c0_26, %c0_27] : memref<32x16xbf16, #tpu.memory_space<vmem>>, vector<32x16xbf16>
    %cst_28 = arith.constant dense<0.000000e+00> : vector<2x16xf32>
    %174 = tpu.matmul %172, %173, %cst_28 {dimension_numbers = #tpu.dot_dimension_numbers<[1], [0], [0], [1], [0, 0, 1, 1], [], []>} : vector<2x32xbf16>, vector<32x16xbf16>, vector<2x16xf32> -> vector<2x16xf32>
    %c0_29 = arith.constant 0 : index
    %c0_30 = arith.constant 0 : index
    %175 = vector.load %arg5[%c0_29, %c0_30] : memref<1x16xf32, #tpu.memory_space<vmem>>, vector<1x16xf32>
    %176 = vector.broadcast %175 : vector<1x16xf32> to vector<2x16xf32>
    %177 = arith.addf %174, %176 : vector<2x16xf32>
    %cst_31 = arith.constant 0.000000e+00 : f32
    %178 = vector.broadcast %cst_31 : f32 to vector<2x16xf32>
    %179 = arith.maximumf %177, %178 : vector<2x16xf32>
    %180 = arith.truncf %179 : vector<2x16xf32> to vector<2x16xbf16>
    %c0_32 = arith.constant 0 : index
    %c0_33 = arith.constant 0 : index
    %181 = vector.load %arg6[%c0_32, %c0_33] : memref<16x8xbf16, #tpu.memory_space<vmem>>, vector<16x8xbf16>
    %cst_34 = arith.constant dense<0.000000e+00> : vector<2x8xf32>
    %182 = tpu.matmul %180, %181, %cst_34 {dimension_numbers = #tpu.dot_dimension_numbers<[1], [0], [0], [1], [0, 0, 1, 1], [], []>} : vector<2x16xbf16>, vector<16x8xbf16>, vector<2x8xf32> -> vector<2x8xf32>
    %c0_35 = arith.constant 0 : index
    %c0_36 = arith.constant 0 : index
    %183 = vector.load %arg7[%c0_35, %c0_36] : memref<1x8xf32, #tpu.memory_space<vmem>>, vector<1x8xf32>
    %184 = vector.broadcast %183 : vector<1x8xf32> to vector<2x8xf32>
    %185 = arith.addf %182, %184 : vector<2x8xf32>
    %186 = math.tanh %185 : vector<2x8xf32>
    %c0_37 = arith.constant 0 : index
    %c0_38 = arith.constant 0 : index
    %187 = vector.load %arg8[%c0_37, %c0_38] : memref<2x8xf32, #tpu.memory_space<vmem>>, vector<2x8xf32>
    tpu.vector_store %arg8[%c0_37, %c0_38], %186 {strides = array<i32>} : memref<2x8xf32, #tpu.memory_space<vmem>>, vector<2x8xf32>,
    return
  }
}

</mosaic_0001>

<bundles_post_ra>
// kernel: recurrent_forward.1
= control target key start
LH: loop header
LB: loop body
LE: loop exit
PB: predicated region body
PF: predicated region fallthrough
CT: control target
= control target key end

     0   :  { %vm46_vm0 = vcmask 1041408   ;;  %v1093_v1 = vmov 0.0   ;;  %vm1094_vm1 = vmmov 0   ;;  %vm42_vm2 = vcmask 31744   ;;  %s1308_s0 = inlined_call_operand.vmem [shape: f32[2,8,4], index: 0, kind: input, shape index: {}]   ;;  %s1309_s1 = inlined_call_operand.vmem [shape: bf16[4,128], index: 1, kind: input, shape index: {}]   ;;  %s1310_s2 = inlined_call_operand.vmem [shape: bf16[32,128], index: 2, kind: input, shape index: {}]   ;;  %s1311_s3 = inlined_call_operand.vmem [shape: f32[1,128], index: 3, kind: input, shape index: {}]   ;;  %s1312_s4 = inlined_call_operand.vmem [shape: bf16[32,16], index: 4, kind: input, shape index: {}]   ;;  %s1313_s5 = inlined_call_operand.vmem [shape: f32[1,16], index: 5, kind: input, shape index: {}]   ;;  %s1314_s6 = inlined_call_operand.vmem [shape: bf16[16,8], index: 6, kind: input, shape index: {}]   ;;  %s1315_s7 = inlined_call_operand.vmem [shape: f32[1,8], index: 7, kind: input, shape index: {}]   ;;  %s1316_s8 = inlined_call_operand.hbm [shape: f32[2,8], index: 8, kind: output, shape index: {}]  }
   0x1   :  { %v34_v0 = vld [vmem:[%s1309_s1] sm:$0x3]  ;;  %910 = vmatprep.subr.bf16.mxu0 %v1093_v1  ;;  %916 = vmatprep.subr.bf16.mxu1 %v1093_v1  ;;  %v1152_v3 = vld [vmem:[%s1310_s2 + $0x8] sm:$0xff]  }
   0x2   :  { %v48_v2 = vsel %vm46_vm0, %v34_v0, 0  ;;  %v31_v4 = vld [vmem:[%s1308_s0] sm:$0xff]  ;;  %912 = vmatprep.mubr.msk.bf16.mxu0 %vm1094_vm1, %v1093_v1  ;;  %v32_v5 = vld [vmem:[%s1308_s0 + $0x8] sm:$0xff]  ;;  %917 = vmatpush3.bf16.msra.mxu1 %v1152_v3 }
   0x3   :  { %911 = vmatpush3.bf16.msra.mxu0 %v48_v2  ;;  %v33_v6 = vpack.c.bf16 %v32_v5, %v31_v4  ;;  %v1166_v7 = vld [vmem:[%s1310_s2] sm:$0xff]   ;;  %920 = vmatprep.mubr.msk.bf16.mxu1 %vm1094_vm1, %v1093_v1 }
   0x4   :  { %918 = vmatprep.subr.bf16.mxu1 %v1093_v1  ;;  %924 = vmatprep.subr.bf16.mxu0 %v1093_v1 }
   0x6   :  { %913 = vmatmul.mubr.msk.bf16.vlgmr.msra.gmra.mxu0 %vm42_vm2, %v33_v6 }
   0x7   :  { %13 = vsyncpa [#allocation3], 0  ;;  %925 = vmatpush3.bf16.msra.mxu0 %v1152_v3  ;;  %928 = vmatprep.mubr.msk.bf16.mxu0 %vm1094_vm1, %v1093_v1  ;;  %v1095_v8 = vmov 0   ;;  %v853_v9 = vld [vmem:[%s1311_s3] ss:$0 sm:$0xff]  ;;  %vm110_vm3 = vcmask 1041409  }
   0x8   :  { %919 = vmatpush3.bf16.msra.mxu1 %v1166_v7  ;;  %926 = vmatprep.subr.bf16.mxu0 %v1093_v1  ;;  %s1096_s3 = smov 64   ;;  %s1097_s14 = smov 32   ;;  %vm113_vm4 = vcmask 261120   ;;  %vm792_vm5 = vcmask 130048   ;;  %vm837_vm6 = vcmask 58368  }
   0x9   :  { %932 = vmatprep.subr.bf16.mxu1 %v1093_v1 }
   0xb   :  { %921 = vmatmul.mubr.bf16.vlgmr.msra.gmra.mxu1 %v1095_v8  ;;  %927 = vmatpush3.bf16.msra.mxu0 %v1166_v7 }
   0xc   :  { %933 = vmatpush3.bf16.msra.mxu1 %v1152_v3  ;;  %936 = vmatprep.mubr.msk.bf16.mxu1 %vm1094_vm1, %v1093_v1 }
   0xd   :  { %934 = vmatprep.subr.bf16.mxu1 %v1093_v1  ;;  %940 = vmatprep.subr.bf16.mxu0 %v1093_v1 }
  0x10   :  { %935 = vmatpush3.bf16.msra.mxu1 %v1166_v7 }
  0x11   :  { %948 = vmatprep.subr.bf16.mxu1 %v1093_v1 }
  0xc6   :  { %v84_v10 = vpop.f32.mrf.mxu0 }
  0xc7   :  { %v85_v11 = vadd.f32 %v853_v9, %v84_v10 }
  0xc8   :  { %v914_v12 = vpop.f32.mrf.mxu0 }
  0xc9   :  { %v185_v16 = vrot.slane %v85_v11, 1  ;;  %v259_v17 = vrot.slane %v85_v11, 2  ;;  %v334_v19 = vrot.slane %v85_v11, 3  ;;  %v409_v20 = vrot.slane %v85_v11, 4 }
  0xca   :  { %v87_v13 = vpop.f32.mrf.mxu0  ;;  %v484_v21 = vrot.slane %v85_v11, 5  ;;  %v559_v22 = vrot.slane %v85_v11, 6  ;;  %v634_v36 = vrot.slane %v85_v11, 7 }
  0xcb   :  { %v88_v14 = vadd.f32 %v853_v9, %v87_v13  ;;  %v151_v15 = vpop.f32.mrf.mxu1 }
  0xcc   :  { %v915_v18 = vpop.f32.mrf.mxu0 }
  0xcd   :  { %v109_v23 = vrot.slane %v88_v14, 7  ;;  %v922_v24 = vpop.f32.mrf.mxu1  ;;  %v186_v25 = vsel %vm110_vm3, %v88_v14, %v185_v16  ;;  %v260_v26 = vrot.slane %v88_v14, 1  ;;  %v335_v27 = vrot.slane %v88_v14, 2 }
  0xce   :  { %v410_v28 = vrot.slane %v88_v14, 3  ;;  %v485_v29 = vrot.slane %v88_v14, 4  ;;  %v560_v30 = vrot.slane %v88_v14, 5  ;;  %v635_v31 = vrot.slane %v88_v14, 6 }
  0xcf   :  { %v111_v32 = vsel %vm110_vm3, %v109_v23, %v85_v11  ;;  %v154_v33 = vpop.f32.mrf.mxu1  ;;  %v1192_v34 = vsel %vm110_vm3, %v260_v26, %v259_v17  ;;  %v1195_v35 = vsel %vm110_vm3, %v335_v27, %v334_v19 }
  0xd0   :  { %v152_v37 = vadd.f32 %v151_v15, %v111_v32  ;;  %v1198_v38 = vsel %vm110_vm3, %v410_v28, %v409_v20  ;;  %v1201_v39 = vsel %vm110_vm3, %v485_v29, %v484_v21  ;;  %v1204_v40 = vsel %vm110_vm3, %v560_v30, %v559_v22 }
  0xd1   :  { %v923_v41 = vpop.f32.mrf.mxu1  ;;  %v1207_v42 = vsel %vm110_vm3, %v635_v31, %v634_v36 }
  0xd2   :  { %1005 = vtanh.f32 %v152_v37  ;;  %v857_v44 = vmul.f32 -1.442695, %v152_v37 }
  0xd4   :  { %1007 = vpow2.f32 %v857_v44 }
  0xdf   :  { %v1006_v43 = vpop.eup %1005 }
  0xe0   :  { %166 = vrot.lane.b32.xlu0 %v1006_v43, %s1096_s3 }
  0xe1   :  { %v1008_v45 = vpop.eup %1007 }
  0xe2   :  { %v160_v46 = vadd.f32 1.0, %v1008_v45 }
  0xe4   :  { %1009 = vrcp.f32 %v160_v46 }
  0xf1   :  { %v1010_v47 = vpop.eup %1009 }
  0xf2   :  { %v164_v50 = vmul.f32 0.0, %v1010_v47 }
 0x152   :  { %v167_v48 = vpop.permute.xlu0 %166 }
 0x153   :  { %v169_v49 = vmul.f32 %v1010_v47, %v167_v48 }
 0x155   :  { %171 = vrot.lane.b32.xlu0 %v169_v49, %s1097_s14 }
 0x1c7   :  { %v172_v51 = vpop.permute.xlu0 %171 }
 0x1c8   :  { %v174_v52 = vadd.f32 %v172_v51, %v164_v50 }
 0x1ca   :  { %1011 = vtanh.f32 %v174_v52 }
 0x1d7   :  { %v1012_v53 = vpop.eup %1011 }
 0x1d8   :  { %177 = vrot.lane.b32.xlu1 %v1012_v53, %s1096_s3 }
 0x24a   :  { %v178_v54 = vpop.permute.xlu1 %177 }
 0x24b   :  { %v180_v55 = vmul.f32 %v1010_v47, %v178_v54 }
 0x24d   :  { %v181_v56 = vpack.c.bf16 %v180_v55, %v180_v55 }
 0x24f   :  { %183 = vrot.lane.b32.xlu1 %v181_v56, %s1097_s14 }
 0x2c1   :  { %v184_v57 = vpop.permute.xlu1 %183 }
 0x2c2   :  { %929 = vmatmul.mubr.msk.bf16.vlgmr.msra.gmra.mxu0 %vm113_vm4, %v184_v57 }
 0x2c3   :  { %941 = vmatpush3.bf16.msra.mxu0 %v1152_v3  ;;  %944 = vmatprep.mubr.msk.bf16.mxu0 %vm1094_vm1, %v1093_v1 }
 0x2c4   :  { %942 = vmatprep.subr.bf16.mxu0 %v1093_v1 }
 0x2c7   :  { %943 = vmatpush3.bf16.msra.mxu0 %v1166_v7 }
 0x2c8   :  { %956 = vmatprep.subr.bf16.mxu0 %v1093_v1 }
 0x382   :  { %v225_v58 = vpop.f32.mrf.mxu0 }
 0x383   :  { %v226_v59 = vadd.f32 %v225_v58, %v186_v25 }
 0x384   :  { %v930_v60 = vpop.f32.mrf.mxu0 }
 0x385   :  { %1013 = vtanh.f32 %v226_v59  ;;  %v859_v0 = vmul.f32 -1.442695, %v226_v59 }
 0x386   :  { %v228_v61 = vpop.f32.mrf.mxu0 }
 0x387   :  { %1015 = vpow2.f32 %v859_v0 }
 0x388   :  { %v931_v62 = vpop.f32.mrf.mxu0 }
 0x392   :  { %v1014_v63 = vpop.eup %1013 }
 0x393   :  { %240 = vrot.lane.b32.xlu0 %v1014_v63, %s1096_s3 }
 0x394   :  { %v1016_v2 = vpop.eup %1015 }
 0x395   :  { %v234_v4 = vadd.f32 1.0, %v1016_v2 }
 0x397   :  { %1017 = vrcp.f32 %v234_v4 }
 0x3a4   :  { %v1018_v5 = vpop.eup %1017 }
 0x3a5   :  { %v238_v9 = vmul.f32 %v1018_v5, %v174_v52 }
 0x405   :  { %v241_v6 = vpop.permute.xlu0 %240 }
 0x406   :  { %v243_v8 = vmul.f32 %v1018_v5, %v241_v6 }
 0x408   :  { %245 = vrot.lane.b32.xlu1 %v243_v8, %s1097_s14 }
 0x47a   :  { %v246_v10 = vpop.permute.xlu1 %245 }
 0x47b   :  { %v248_v11 = vadd.f32 %v246_v10, %v238_v9 }
 0x47d   :  { %1019 = vtanh.f32 %v248_v11 }
 0x48a   :  { %v1020_v12 = vpop.eup %1019 }
 0x48b   :  { %251 = vrot.lane.b32.xlu0 %v1020_v12, %s1096_s3 }
 0x4fd   :  { %v252_v13 = vpop.permute.xlu0 %251 }
 0x4fe   :  { %v254_v14 = vmul.f32 %v1018_v5, %v252_v13 }
 0x500   :  { %v255_v15 = vpack.c.bf16 %v254_v14, %v254_v14 }
 0x502   :  { %257 = vrot.lane.b32.xlu1 %v255_v15, %s1097_s14 }
 0x574   :  { %v258_v16 = vpop.permute.xlu1 %257 }
 0x575   :  { %937 = vmatmul.mubr.msk.bf16.vlgmr.msra.gmra.mxu1 %vm113_vm4, %v258_v16 }
 0x576   :  { %949 = vmatpush3.bf16.msra.mxu1 %v1152_v3  ;;  %952 = vmatprep.mubr.msk.bf16.mxu1 %vm1094_vm1, %v1093_v1 }
 0x577   :  { %950 = vmatprep.subr.bf16.mxu1 %v1093_v1 }
 0x57a   :  { %951 = vmatpush3.bf16.msra.mxu1 %v1166_v7 }
 0x57b   :  { %964 = vmatprep.subr.bf16.mxu1 %v1093_v1 }
 0x635   :  { %v300_v17 = vpop.f32.mrf.mxu1 }
 0x636   :  { %v301_v18 = vadd.f32 %v300_v17, %v1192_v34 }
 0x637   :  { %v938_v19 = vpop.f32.mrf.mxu1 }
 0x638   :  { %1021 = vtanh.f32 %v301_v18  ;;  %v861_v23 = vmul.f32 -1.442695, %v301_v18 }
 0x639   :  { %v303_v20 = vpop.f32.mrf.mxu1 }
 0x63a   :  { %1023 = vpow2.f32 %v861_v23 }
 0x63b   :  { %v939_v21 = vpop.f32.mrf.mxu1 }
 0x645   :  { %v1022_v22 = vpop.eup %1021 }
 0x646   :  { %315 = vrot.lane.b32.xlu0 %v1022_v22, %s1096_s3 }
 0x647   :  { %v1024_v24 = vpop.eup %1023 }
 0x648   :  { %v309_v25 = vadd.f32 1.0, %v1024_v24 }
 0x64a   :  { %1025 = vrcp.f32 %v309_v25 }
 0x657   :  { %v1026_v26 = vpop.eup %1025 }
 0x658   :  { %v313_v29 = vmul.f32 %v1026_v26, %v248_v11 }
 0x6b8   :  { %v316_v27 = vpop.permute.xlu0 %315 }
 0x6b9   :  { %v318_v28 = vmul.f32 %v1026_v26, %v316_v27 }
 0x6bb   :  { %320 = vrot.lane.b32.xlu1 %v318_v28, %s1097_s14 }
 0x72d   :  { %v321_v30 = vpop.permute.xlu1 %320 }
 0x72e   :  { %v323_v31 = vadd.f32 %v321_v30, %v313_v29 }
 0x730   :  { %1027 = vtanh.f32 %v323_v31 }
 0x73d   :  { %v1028_v32 = vpop.eup %1027 }
 0x73e   :  { %326 = vrot.lane.b32.xlu0 %v1028_v32, %s1096_s3 }
 0x7b0   :  { %v327_v33 = vpop.permute.xlu0 %326 }
 0x7b1   :  { %v329_v34 = vmul.f32 %v1026_v26, %v327_v33 }
 0x7b3   :  { %v330_v36 = vpack.c.bf16 %v329_v34, %v329_v34 }
 0x7b5   :  { %332 = vrot.lane.b32.xlu1 %v330_v36, %s1097_s14 }
 0x827   :  { %v333_v37 = vpop.permute.xlu1 %332 }
 0x828   :  { %945 = vmatmul.mubr.msk.bf16.vlgmr.msra.gmra.mxu0 %vm113_vm4, %v333_v37 }
 0x829   :  { %957 = vmatpush3.bf16.msra.mxu0 %v1152_v3  ;;  %960 = vmatprep.mubr.msk.bf16.mxu0 %vm1094_vm1, %v1093_v1 }
 0x82a   :  { %958 = vmatprep.subr.bf16.mxu0 %v1093_v1 }
 0x82d   :  { %959 = vmatpush3.bf16.msra.mxu0 %v1166_v7 }
 0x82e   :  { %972 = vmatprep.subr.bf16.mxu0 %v1093_v1 }
 0x8e8   :  { %v375_v41 = vpop.f32.mrf.mxu0 }
 0x8e9   :  { %v376_v43 = vadd.f32 %v375_v41, %v1195_v35 }
 0x8ea   :  { %v946_v44 = vpop.f32.mrf.mxu0 }
 0x8eb   :  { %1029 = vtanh.f32 %v376_v43  ;;  %v863_v48 = vmul.f32 -1.442695, %v376_v43 }
 0x8ec   :  { %v378_v45 = vpop.f32.mrf.mxu0 }
 0x8ed   :  { %1031 = vpow2.f32 %v863_v48 }
 0x8ee   :  { %v947_v46 = vpop.f32.mrf.mxu0 }
 0x8f8   :  { %v1030_v47 = vpop.eup %1029 }
 0x8f9   :  { %390 = vrot.lane.b32.xlu0 %v1030_v47, %s1096_s3 }
 0x8fa   :  { %v1032_v49 = vpop.eup %1031 }
 0x8fb   :  { %v384_v50 = vadd.f32 1.0, %v1032_v49 }
 0x8fd   :  { %1033 = vrcp.f32 %v384_v50 }
 0x90a   :  { %v1034_v51 = vpop.eup %1033 }
 0x90b   :  { %v388_v54 = vmul.f32 %v1034_v51, %v323_v31 }
 0x96b   :  { %v391_v52 = vpop.permute.xlu0 %390 }
 0x96c   :  { %v393_v53 = vmul.f32 %v1034_v51, %v391_v52 }
 0x96e   :  { %395 = vrot.lane.b32.xlu1 %v393_v53, %s1097_s14 }
 0x9e0   :  { %v396_v55 = vpop.permute.xlu1 %395 }
 0x9e1   :  { %v398_v35 = vadd.f32 %v396_v55, %v388_v54 }
 0x9e3   :  { %1035 = vtanh.f32 %v398_v35 }
 0x9f0   :  { %v1036_v56 = vpop.eup %1035 }
 0x9f1   :  { %401 = vrot.lane.b32.xlu0 %v1036_v56, %s1096_s3 }
 0xa63   :  { %v402_v57 = vpop.permute.xlu0 %401 }
 0xa64   :  { %v404_v58 = vmul.f32 %v1034_v51, %v402_v57 }
 0xa66   :  { %v405_v59 = vpack.c.bf16 %v404_v58, %v404_v58 }
 0xa68   :  { %407 = vrot.lane.b32.xlu1 %v405_v59, %s1097_s14 }
 0xada   :  { %v408_v60 = vpop.permute.xlu1 %407 }
 0xadb   :  { %953 = vmatmul.mubr.msk.bf16.vlgmr.msra.gmra.mxu1 %vm113_vm4, %v408_v60 }
 0xadc   :  { %965 = vmatpush3.bf16.msra.mxu1 %v1152_v3  ;;  %968 = vmatprep.mubr.msk.bf16.mxu1 %vm1094_vm1, %v1093_v1 }
 0xadd   :  { %966 = vmatprep.subr.bf16.mxu1 %v1093_v1 }
 0xae0   :  { %967 = vmatpush3.bf16.msra.mxu1 %v1166_v7 }
 0xae1   :  { %980 = vmatprep.subr.bf16.mxu1 %v1093_v1 }
 0xb9b   :  { %v450_v61 = vpop.f32.mrf.mxu1 }
 0xb9c   :  { %v451_v62 = vadd.f32 %v450_v61, %v1198_v38 }
 0xb9d   :  { %v954_v63 = vpop.f32.mrf.mxu1 }
 0xb9e   :  { %1037 = vtanh.f32 %v451_v62  ;;  %v865_v5 = vmul.f32 -1.442695, %v451_v62 }
 0xb9f   :  { %v453_v0 = vpop.f32.mrf.mxu1 }
 0xba0   :  { %1039 = vpow2.f32 %v865_v5 }
 0xba1   :  { %v955_v2 = vpop.f32.mrf.mxu1 }
 0xbab   :  { %v1038_v4 = vpop.eup %1037 }
 0xbac   :  { %465 = vrot.lane.b32.xlu0 %v1038_v4, %s1096_s3 }
 0xbad   :  { %v1040_v6 = vpop.eup %1039 }
 0xbae   :  { %v459_v8 = vadd.f32 1.0, %v1040_v6 }
 0xbb0   :  { %1041 = vrcp.f32 %v459_v8 }
 0xbbd   :  { %v1042_v9 = vpop.eup %1041 }
 0xbbe   :  { %v463_v12 = vmul.f32 %v1042_v9, %v398_v35 }
 0xc1e   :  { %v466_v10 = vpop.permute.xlu0 %465 }
 0xc1f   :  { %v468_v11 = vmul.f32 %v1042_v9, %v466_v10 }
 0xc21   :  { %470 = vrot.lane.b32.xlu1 %v468_v11, %s1097_s14 }
 0xc93   :  { %v471_v13 = vpop.permute.xlu1 %470 }
 0xc94   :  { %v473_v38 = vadd.f32 %v471_v13, %v463_v12  ;;  %v1002_v12 = vld [vmem:[%s1312_s4 + $0x8] sm:$0xff]   ;;  %v1003_v13 = vld [vmem:[%s1312_s4] sm:$0xff]  }
 0xc96   :  { %1043 = vtanh.f32 %v473_v38 }
 0xca3   :  { %v1044_v14 = vpop.eup %1043 }
 0xca4   :  { %476 = vrot.lane.b32.xlu0 %v1044_v14, %s1096_s3  ;;  %v1004_v14 = vld [vmem:[%s1314_s6] sm:$0xff]  }
 0xd16   :  { %v477_v15 = vpop.permute.xlu0 %476 }
 0xd17   :  { %v479_v16 = vmul.f32 %v1042_v9, %v477_v15 }
 0xd19   :  { %v480_v17 = vpack.c.bf16 %v479_v16, %v479_v16 }
 0xd1b   :  { %482 = vrot.lane.b32.xlu1 %v480_v17, %s1097_s14 }
 0xd8d   :  { %v483_v18 = vpop.permute.xlu1 %482 }
 0xd8e   :  { %961 = vmatmul.mubr.msk.bf16.vlgmr.msra.gmra.mxu0 %vm113_vm4, %v483_v18 }
 0xd8f   :  { %973 = vmatpush3.bf16.msra.mxu0 %v1152_v3  ;;  %976 = vmatprep.mubr.msk.bf16.mxu0 %vm1094_vm1, %v1093_v1 }
 0xd90   :  { %974 = vmatprep.subr.bf16.mxu0 %v1093_v1 }
 0xd93   :  { %975 = vmatpush3.bf16.msra.mxu0 %v1166_v7 }
 0xd94   :  { %988 = vmatprep.subr.bf16.mxu0 %v1093_v1 }
 0xe4e   :  { %v525_v19 = vpop.f32.mrf.mxu0 }
 0xe4f   :  { %v526_v20 = vadd.f32 %v525_v19, %v1201_v39 }
 0xe50   :  { %v962_v21 = vpop.f32.mrf.mxu0 }
 0xe51   :  { %1045 = vtanh.f32 %v526_v20  ;;  %v867_v3 = vmul.f32 -1.442695, %v526_v20 }
 0xe52   :  { %v528_v22 = vpop.f32.mrf.mxu0 }
 0xe53   :  { %1047 = vpow2.f32 %v867_v3 }
 0xe54   :  { %v963_v23 = vpop.f32.mrf.mxu0 }
 0xe5e   :  { %v1046_v24 = vpop.eup %1045 }
 0xe5f   :  { %540 = vrot.lane.b32.xlu0 %v1046_v24, %s1096_s3 }
 0xe60   :  { %v1048_v25 = vpop.eup %1047 }
 0xe61   :  { %v534_v26 = vadd.f32 1.0, %v1048_v25  ;;  %v876_v25 = vld [vmem:[%s1315_s7] ss:$0 sm:$0xff] }
 0xe63   :  { %1049 = vrcp.f32 %v534_v26 }
 0xe70   :  { %v1050_v27 = vpop.eup %1049 }
 0xe71   :  { %v538_v29 = vmul.f32 %v1050_v27, %v473_v38 }
 0xed1   :  { %v541_v28 = vpop.permute.xlu0 %540 }
 0xed2   :  { %v543_v7 = vmul.f32 %v1050_v27, %v541_v28 }
 0xed4   :  { %545 = vrot.lane.b32.xlu1 %v543_v7, %s1097_s14 }
 0xf46   :  { %v546_v30 = vpop.permute.xlu1 %545 }
 0xf47   :  { %v548_v39 = vadd.f32 %v546_v30, %v538_v29 }
 0xf49   :  { %1051 = vtanh.f32 %v548_v39 }
 0xf56   :  { %v1052_v31 = vpop.eup %1051 }
 0xf57   :  { %551 = vrot.lane.b32.xlu0 %v1052_v31, %s1096_s3 }
 0xfc9   :  { %v552_v32 = vpop.permute.xlu0 %551 }
 0xfca   :  { %v554_v33 = vmul.f32 %v1050_v27, %v552_v32 }
 0xfcc   :  { %v555_v34 = vpack.c.bf16 %v554_v33, %v554_v33 }
 0xfce   :  { %557 = vrot.lane.b32.xlu1 %v555_v34, %s1097_s14 }
0x1040   :  { %v558_v36 = vpop.permute.xlu1 %557 }
0x1041   :  { %969 = vmatmul.mubr.msk.bf16.vlgmr.msra.gmra.mxu1 %vm113_vm4, %v558_v36 }
0x1042   :  { %984 = vmatprep.mubr.msk.bf16.mxu1 %vm1094_vm1, %v1093_v1  ;;  %981 = vmatpush3.bf16.msra.mxu1 %v1002_v12 }
0x1043   :  { %982 = vmatprep.subr.bf16.mxu1 %v1093_v1 }
0x1046   :  { %983 = vmatpush3.bf16.msra.mxu1 %v1003_v13 }
0x1101   :  { %v600_v37 = vpop.f32.mrf.mxu1 }
0x1102   :  { %v601_v41 = vadd.f32 %v600_v37, %v1204_v40 }
0x1103   :  { %v970_v43 = vpop.f32.mrf.mxu1 }
0x1104   :  { %1053 = vtanh.f32 %v601_v41  ;;  %v869_v47 = vmul.f32 -1.442695, %v601_v41 }
0x1105   :  { %v603_v44 = vpop.f32.mrf.mxu1 }
0x1106   :  { %1055 = vpow2.f32 %v869_v47 }
0x1107   :  { %v971_v45 = vpop.f32.mrf.mxu1 }
0x1111   :  { %v1054_v46 = vpop.eup %1053 }
0x1112   :  { %615 = vrot.lane.b32.xlu0 %v1054_v46, %s1096_s3 }
0x1113   :  { %v1056_v48 = vpop.eup %1055 }
0x1114   :  { %v609_v49 = vadd.f32 1.0, %v1056_v48 }
0x1116   :  { %1057 = vrcp.f32 %v609_v49 }
0x1123   :  { %v1058_v50 = vpop.eup %1057 }
0x1124   :  { %v613_v53 = vmul.f32 %v1058_v50, %v548_v39 }
0x1184   :  { %v616_v51 = vpop.permute.xlu0 %615 }
0x1185   :  { %v618_v52 = vmul.f32 %v1058_v50, %v616_v51 }
0x1187   :  { %620 = vrot.lane.b32.xlu1 %v618_v52, %s1097_s14 }
0x11f9   :  { %v621_v54 = vpop.permute.xlu1 %620 }
0x11fa   :  { %v623_v40 = vadd.f32 %v621_v54, %v613_v53 }
0x11fc   :  { %1059 = vtanh.f32 %v623_v40 }
0x1209   :  { %v1060_v55 = vpop.eup %1059 }
0x120a   :  { %626 = vrot.lane.b32.xlu0 %v1060_v55, %s1096_s3 }
0x127c   :  { %v627_v35 = vpop.permute.xlu0 %626 }
0x127d   :  { %v629_v56 = vmul.f32 %v1058_v50, %v627_v35 }
0x127f   :  { %v630_v57 = vpack.c.bf16 %v629_v56, %v629_v56 }
0x1281   :  { %632 = vrot.lane.b32.xlu1 %v630_v57, %s1097_s14 }
0x12f3   :  { %v633_v58 = vpop.permute.xlu1 %632 }
0x12f4   :  { %977 = vmatmul.mubr.msk.bf16.vlgmr.msra.gmra.mxu0 %vm113_vm4, %v633_v58 }
0x12f5   :  { %990 = vmatprep.mubr.msk.bf16.mxu0 %vm1094_vm1, %v1093_v1  ;;  %989 = vmatpush3.bf16.msra.mxu0 %v1004_v14  ;;  %v872_v1 = vld [vmem:[%s1313_s5] ss:$0 sm:$0xff]  ;;  %s1098_s5 = smov [#allocation2]  }
0x12f6   :  { %s845_s23 = sshll.u32 %s1098_s5, 4  ;;  %s846_s23 = int_to_ptr.vmem [resolvable:$true] %s845_s23 }
0x12f7   :  { %s1071_s24 = scalar_lea.vmem %s846_s23, 32  ;;  %p1076_p1 = scmp.lt.s32.totalorder %s846_s23, %s846_s23 }
0x12f8   :  { %p1072_p0 = scmp.ne.s32.totalorder %s846_s23, %s1071_s24  ;;  %p1077_p2 = scmp.lt.s32.totalorder %s1071_s24, %s1071_s24 }
0x12fa   :  { %p1078_p3 = por %p1077_p2, %p1076_p1 }
0x12fc   :  { %p1079_p4 = pnand %p1078_p3, %p1072_p0 }
0x13b4   :  { %v675_v59 = vpop.f32.mrf.mxu0 }
0x13b5   :  { %v676_v60 = vadd.f32 %v675_v59, %v1207_v42 }
0x13b6   :  { %v978_v61 = vpop.f32.mrf.mxu0 }
0x13b7   :  { %1061 = vtanh.f32 %v676_v60  ;;  %v871_v2 = vmul.f32 -1.442695, %v676_v60 }
0x13b8   :  { %v678_v62 = vpop.f32.mrf.mxu0 }
0x13b9   :  { %1063 = vpow2.f32 %v871_v2 }
0x13ba   :  { %v979_v63 = vpop.f32.mrf.mxu0 }
0x13c4   :  { %v1062_v0 = vpop.eup %1061 }
0x13c5   :  { %690 = vrot.lane.b32.xlu0 %v1062_v0, %s1096_s3 }
0x13c6   :  { %v1064_v4 = vpop.eup %1063 }
0x13c7   :  { %v684_v5 = vadd.f32 1.0, %v1064_v4 }
0x13c9   :  { %1065 = vrcp.f32 %v684_v5 }
0x13d6   :  { %v1066_v6 = vpop.eup %1065 }
0x13d7   :  { %v688_v10 = vmul.f32 %v1066_v6, %v623_v40 }
0x1437   :  { %v691_v8 = vpop.permute.xlu0 %690 }
0x1438   :  { %v693_v9 = vmul.f32 %v1066_v6, %v691_v8 }
0x143a   :  { %695 = vrot.lane.b32.xlu1 %v693_v9, %s1097_s14 }
0x14ac   :  { %v696_v11 = vpop.permute.xlu1 %695 }
0x14ad   :  { %v698_v42 = vadd.f32 %v696_v11, %v688_v10 }
0x14af   :  { %1067 = vtanh.f32 %v698_v42 }
0x14bc   :  { %v1068_v38 = vpop.eup %1067 }
0x14bd   :  { %701 = vrot.lane.b32.xlu0 %v1068_v38, %s1096_s3 }
0x152f   :  { %v702_v15 = vpop.permute.xlu0 %701 }
0x1530   :  { %v704_v16 = vmul.f32 %v1066_v6, %v702_v15 }
0x1532   :  { %v705_v17 = vpack.c.bf16 %v704_v16, %v704_v16 }
0x1534   :  { %718 = vrot.lane.b32.xlu1 %v705_v17, %s1097_s14 }
0x15a6   :  { %v719_v18 = vpop.permute.xlu1 %718 }
0x15a7   :  { %985 = vmatmul.mubr.msk.bf16.vlgmr.msra.gmra.mxu1 %vm113_vm4, %v719_v18 }
0x1667   :  { %v769_v19 = vpop.f32.mrf.mxu1 }
0x1668   :  { %v770_v20 = vadd.f32 %v872_v1, %v769_v19 }
0x1669   :  { %v986_v21 = vpop.f32.mrf.mxu1 }
0x166a   :  { %v775_v22 = vmax.f32 %v770_v20, 0.0 }
0x166b   :  { %v772_v23 = vpop.f32.mrf.mxu1 }
0x166c   :  { %v776_v24 = vpack.c.bf16 %v775_v22, %v775_v22 }
0x166d   :  { %v987_v3 = vpop.f32.mrf.mxu1 }
0x166e   :  { %991 = vmatmul.mubr.msk.bf16.vlgmr.msra.gmra.mxu0 %vm792_vm5, %v776_v24 }
0x172e   :  { %v830_v26 = vpop.f32.mrf.mxu0 }
0x172f   :  { %v831_v27 = vadd.f32 %v876_v25, %v830_v26 }
0x1730   :  { %v992_v28 = vpop.f32.mrf.mxu0 }
0x1731   :  { %1069 = vtanh.f32 %v831_v27 }
0x1732   :  { %v833_v7 = vpop.f32.mrf.mxu0 }
0x1734   :  { %v993_v29 = vpop.f32.mrf.mxu0 }
0x173e   :  { %v1070_v30 = vpop.eup %1069 }
0x173f   :  { %838 = vst.msk [vmem:[#allocation2] sm:$0x3] %vm837_vm6, %v1070_v30 }
0x1740   :  { %1082 = shalt.err (!%p1079_p4)
}
0x1741   :  { %848 = dma.vmem_to_hbm [thread:$0]  %s846_s23, 32, %s1316_s8, [#allocation3]  }
0x1742   :  { %1091 = dma.done.wait [#allocation3], 32  }
0x1743   :  { %1092 = vsyncadd [#allocation3], 4294967264 }
0x1744   :  { %852 = vsyncpa [#allocation3], 1 }

</bundles_post_ra>
